<compile_context>
chip_gen: v6e
topology: v6e:2x2x1
jax: 0.10.0
libtpu: 0.0.40
codegen_flags: <defaults>
</compile_context>

<pallas_src>
import math

import jax
import jax.numpy as jnp
from jax.experimental import pallas as pl
from jax.experimental.pallas import tpu as pltpu


def _round_up(x, m):
    return ((x + m - 1) // m) * m


# --------------------------- shared head epilogue ----------------------------

def _heads(feat, idx, ang, emb_w1, w1_feat, w1_ang, b1, w2, b2, w3, b3):
    """Region-embedding gather + angle features + both regression heads."""
    tm = feat.shape[0]
    num_regions = emb_w1.shape[0]

    # Region embedding gather, pre-folded into head W1 (emb_w1 =
    # embedding_table @ W1_emb), implemented as a bf16 one-hot matmul.
    r_iota = jax.lax.broadcasted_iota(jnp.int32, (tm, num_regions), 1)
    one_hot = (r_iota == idx).astype(jnp.bfloat16)
    region_term = jnp.dot(one_hot, emb_w1, preferred_element_type=jnp.float32)

    # Angle (sin, cos) contribution: VPU broadcast, not a K=2 MXU contraction.
    angle_term = ang[:, 0:1] * w1_ang[0:1, :] + ang[:, 1:2] * w1_ang[1:2, :]

    # Merged lat/lon heads (W2 / W3 are block-diagonal).  Dropout = identity.
    h1 = jnp.dot(feat.astype(jnp.bfloat16), w1_feat,
                 preferred_element_type=jnp.float32)
    h1 = jnp.maximum(h1 + region_term + angle_term + b1, 0.0)
    h2 = jnp.dot(h1.astype(jnp.bfloat16), w2, preferred_element_type=jnp.float32)
    h2 = jnp.maximum(h2 + b2, 0.0)
    return jnp.dot(h2.astype(jnp.bfloat16), w3,
                   preferred_element_type=jnp.float32) + b3


# ------------------------------ fused kernels --------------------------------

def _geo_kernel_single(idx_ref, ang_ref, x_ref, bb_w_ref, bb_b_ref,
                       emb_w1_ref, w1_feat_ref, w1_ang_ref, b1_ref,
                       w2_ref, b2_ref, w3_ref, b3_ref, out_ref):
    # Whole flattened image in one VMEM tile: no K grid axis, no accumulator.
    feat = jnp.dot(x_ref[...], bb_w_ref[...], preferred_element_type=jnp.float32)
    feat = jnp.maximum(feat + bb_b_ref[...], 0.0)
    out_ref[...] = _heads(feat, idx_ref[...], ang_ref[...], emb_w1_ref[...],
                          w1_feat_ref[...], w1_ang_ref[...], b1_ref[...],
                          w2_ref[...], b2_ref[...], w3_ref[...], b3_ref[...])


def _geo_kernel_streamed(idx_ref, ang_ref, x_ref, bb_w_ref, bb_b_ref,
                         emb_w1_ref, w1_feat_ref, w1_ang_ref, b1_ref,
                         w2_ref, b2_ref, w3_ref, b3_ref, out_ref, feat_acc):
    # Backbone matmul streamed over the flattened-image K axis (bf16 operands,
    # f32 accumulation in VMEM scratch).
    k = pl.program_id(1)

    @pl.when(k == 0)
    def _():
        feat_acc[...] = jnp.zeros_like(feat_acc)

    feat_acc[...] += jnp.dot(x_ref[...], bb_w_ref[...],
                             preferred_element_type=jnp.float32)

    @pl.when(k == pl.num_programs(1) - 1)
    def _():
        feat = jnp.maximum(feat_acc[...] + bb_b_ref[...], 0.0)
        out_ref[...] = _heads(feat, idx_ref[...], ang_ref[...], emb_w1_ref[...],
                              w1_feat_ref[...], w1_ang_ref[...], b1_ref[...],
                              w2_ref[...], b2_ref[...], w3_ref[...], b3_ref[...])


# ------------------------------ JAX wrapper ----------------------------------

def _pick_tm(n, tm_max):
    if n <= 8:
        return n                        # block == full batch dim (always legal)
    tm = min(tm_max, (n // 8) * 8)      # multiple of 8, <= n (partial last block)
    # v7x megacore: keep at least 2 batch blocks so both TensorCores get work.
    if pl.cdiv(n, tm) < 2 and tm >= 16:
        tm = _round_up(tm // 2, 8)
    return tm


def _pick_tk(in_dim, tk_max):
    """Backbone-K block size.  Returns (tk, needs_k_pad)."""
    if in_dim <= tk_max:
        return in_dim, False            # single pass: whole K in one block
    cand = (tk_max // 128) * 128
    while cand >= 128:
        if in_dim % cand == 0:
            return cand, False          # no pad copy of x needed
        cand -= 128
    # Fallback: zero-pad K of both x and bb_w (garbage * 0 would be NaN, so the
    # pad region of both operands must be explicit zeros).
    return (tk_max // 128) * 128, True


def geo_regression_forward(fused, image, region_idx, angle_sin, angle_cos,
                           *, tm_max=256, tk_max=2048):
    n = image.shape[0]
    # Dominant HBM stream in bf16 (single cast here; ideally produced as bf16).
    x = image.reshape(n, -1)
    if x.dtype != jnp.bfloat16:
        x = x.astype(jnp.bfloat16)
    in_dim = x.shape[1]

    bb_w = fused["bb_w"]
    f_dim = bb_w.shape[1]
    two_h = fused["b1"].shape[1]
    h_out = fused["w2"].shape[1]
    n_reg = fused["emb_w1"].shape[0]

    tm = _pick_tm(n, tm_max)
    nb = pl.cdiv(n, tm)
    tk, needs_k_pad = _pick_tk(in_dim, tk_max)
    single = (tk == in_dim) and not needs_k_pad

    if needs_k_pad:
        k_dim = _round_up(in_dim, tk)
        x = jnp.pad(x, ((0, 0), (0, k_dim - in_dim)))
        bb_w = jnp.pad(bb_w, ((0, k_dim - in_dim), (0, 0)))
    else:
        k_dim = in_dim
    kb = k_dim // tk

    idx2 = region_idx.astype(jnp.int32).reshape(n, 1)
    ang = jnp.stack([angle_sin, angle_cos], axis=1).astype(jnp.float32)

    # Rough VMEM footprint (double-buffered inputs + f32 scratch) -> scoped limit.
    est = 2 * (tm * tk * 2 + tk * f_dim * 2 + n_reg * two_h * 2
               + f_dim * two_h * 2 + two_h * h_out * 2 + h_out * 2 * 2
               + 5 * two_h * 4 + tm * 16)
    est += tm * f_dim * 4
    vmem_limit = int(min(max(2 * est, 32 << 20), 48 << 20))

    if single:
        bmap = lambda i: (i, 0)
        wmap = lambda i: (0, 0)
        grid = (nb,)
        kernel = _geo_kernel_single
        scratch = []
        dims = ("parallel",)
        x_spec = pl.BlockSpec((tm, tk), bmap)
        bb_w_spec = pl.BlockSpec((tk, f_dim), wmap)
    else:
        bmap = lambda i, k: (i, 0)
        wmap = lambda i, k: (0, 0)
        grid = (nb, kb)
        kernel = _geo_kernel_streamed
        scratch = [pltpu.VMEM((tm, f_dim), jnp.float32)]
        dims = ("parallel", "arbitrary")
        x_spec = pl.BlockSpec((tm, tk), lambda i, k: (i, k))
        bb_w_spec = pl.BlockSpec((tk, f_dim), lambda i, k: (k, 0))

    out = pl.pallas_call(
        kernel,
        out_shape=jax.ShapeDtypeStruct((n, 2), jnp.float32),
        grid_spec=pltpu.PrefetchScalarGridSpec(
            num_scalar_prefetch=0,
            grid=grid,
            in_specs=[
                pl.BlockSpec((tm, 1), bmap),          # region_idx
                pl.BlockSpec((tm, 2), bmap),          # angles (sin, cos)
                x_spec,                                # flattened image (bf16)
                bb_w_spec,                             # backbone W (bf16)
                pl.BlockSpec((1, f_dim), wmap),        # backbone b
                pl.BlockSpec((n_reg, two_h), wmap),    # embedding @ W1_emb (bf16)
                pl.BlockSpec((f_dim, two_h), wmap),    # W1 feature slice (bf16)
                pl.BlockSpec((2, two_h), wmap),        # W1 angle rows (f32)
                pl.BlockSpec((1, two_h), wmap),        # b1 merged
                pl.BlockSpec((two_h, h_out), wmap),    # W2 block-diag (bf16)
                pl.BlockSpec((1, h_out), wmap),        # b2 merged
                pl.BlockSpec((h_out, 2), wmap),        # W3 block-diag (bf16)
                pl.BlockSpec((1, 2), wmap),            # b3 merged
            ],
            out_specs=pl.BlockSpec((tm, 2), bmap),
            scratch_shapes=scratch,
        ),
        compiler_params=pltpu.CompilerParams(
            dimension_semantics=dims,
            vmem_limit_bytes=vmem_limit),
    )(idx2, ang, x, bb_w, fused["bb_b"], fused["emb_w1"],
      fused["w1_feat"], fused["w1_ang"], fused["b1"],
      fused["w2"], fused["b2"], fused["w3"], fused["b3"])

    return out[:, 0], out[:, 1]


# --------------------------- parameter handling ------------------------------

def _linear_init(key, fan_in, fan_out):
    # PyTorch nn.Linear default: U(-1/sqrt(fan_in), 1/sqrt(fan_in)).
    kw, kb = jax.random.split(key)
    bound = 1.0 / math.sqrt(fan_in)
    w = jax.random.uniform(kw, (fan_in, fan_out), jnp.float32, -bound, bound)
    b = jax.random.uniform(kb, (1, fan_out), jnp.float32, -bound, bound)
    return w, b


def init_params(key, in_dim, feature_dim, num_regions, embedding_dim,
                head_hidden_dim):
    combined_dim = feature_dim + embedding_dim + 2
    keys = jax.random.split(key, 9)

    bb_w, bb_b = _linear_init(keys[0], in_dim, feature_dim)
    embedding = jax.random.normal(keys[1], (num_regions, embedding_dim),
                                  jnp.float32)

    def head(k0, k1, k2):
        w1, b1 = _linear_init(k0, combined_dim, head_hidden_dim)
        w2, b2 = _linear_init(k1, head_hidden_dim, head_hidden_dim // 2)
        w3, b3 = _linear_init(k2, head_hidden_dim // 2, 1)
        return (w1, b1, w2, b2, w3, b3)

    return {
        "bb_w": bb_w,
        "bb_b": bb_b,
        "embedding": embedding,
        "head_lat": head(keys[2], keys[3], keys[4]),
        "head_lon": head(keys[5], keys[6], keys[7]),
    }


def fuse_params(params, feature_dim, embedding_dim, head_hidden_dim):
    """Merge lat/lon heads, fold embedding into W1, cast MXU weights to bf16."""
    f, e, h = feature_dim, embedding_dim, head_hidden_dim
    h2 = h // 2
    w1a, b1a, w2a, b2a, w3a, b3a = params["head_lat"]
    w1o, b1o, w2o, b2o, w3o, b3o = params["head_lon"]

    # Merge W1 along the output axis, then split the input axis to avoid the
    # (N, feature+emb+2) concat inside the kernel.
    w1 = jnp.concatenate([w1a, w1o], axis=1)          # (f+e+2, 2h)
    w1_feat = w1[:f]                                  # (f, 2h)
    w1_emb = w1[f:f + e]                              # (e, 2h)
    w1_ang = w1[f + e:]                               # (2, 2h)
    b1 = jnp.concatenate([b1a, b1o], axis=1)          # (1, 2h)

    # Fold the embedding table through the head: gather becomes one-hot @ emb_w1.
    emb_w1 = params["embedding"] @ w1_emb             # (num_regions, 2h)

    # Block-diagonal merged second / third layers (lat block, lon block).
    w2 = jnp.zeros((2 * h, 2 * h2), jnp.float32)
    w2 = w2.at[:h, :h2].set(w2a).at[h:, h2:].set(w2o)
    b2 = jnp.concatenate([b2a, b2o], axis=1)          # (1, 2*h2)
    w3 = jnp.zeros((2 * h2, 2), jnp.float32)
    w3 = w3.at[:h2, 0:1].set(w3a).at[h2:, 1:2].set(w3o)
    b3 = jnp.concatenate([b3a, b3o], axis=1)          # (1, 2)

    return {
        "bb_w": params["bb_w"].astype(jnp.bfloat16),
        "bb_b": params["bb_b"],
        "emb_w1": emb_w1.astype(jnp.bfloat16),
        "w1_feat": w1_feat.astype(jnp.bfloat16),
        "w1_ang": w1_ang,                              # f32 (VPU broadcast path)
        "b1": b1,
        "w2": w2.astype(jnp.bfloat16),
        "b2": b2,
        "w3": w3.astype(jnp.bfloat16),
        "b3": b3,
    }


# ---------------------------------- main --------------------------------------

if __name__ == "__main__":
    key = jax.random.PRNGKey(0)
    k_img, k_reg, k_sin, k_cos, k_par = jax.random.split(key, 5)

    # Small shapes consistent with the module's forward.
    N, C, H, W = 2, 4, 16, 16
    feature_dim = 32          # synthetic backbone output dim
    num_regions = 10
    embedding_dim = 16
    head_hidden_dim = 128

    image = jax.random.normal(k_img, (N, C, H, W), jnp.float32)      # NCHW
    region_idx = jax.random.randint(k_reg, (N,), 0, num_regions, jnp.int32)
    angle_sin = jax.random.normal(k_sin, (N,), jnp.float32)
    angle_cos = jax.random.normal(k_cos, (N,), jnp.float32)

    params = init_params(k_par, C * H * W, feature_dim, num_regions,
                         embedding_dim, head_hidden_dim)
    fused = fuse_params(params, feature_dim, embedding_dim, head_hidden_dim)

    fwd = jax.jit(geo_regression_forward)
    lat, lon = fwd(fused, image, region_idx, angle_sin, angle_cos)
    jax.block_until_ready((lat, lon))

    assert lat.shape == (N,) and lon.shape == (N,)
    assert bool(jnp.all(jnp.isfinite(lat))) and bool(jnp.all(jnp.isfinite(lon)))
    print("KERNEL_OK")
</pallas_src>

<mosaic_0001>
module attributes {stable_mosaic.version = 11 : i64} {
  func.func @_geo_kernel_single(%arg0: i32, %arg1: memref<2x1xi32, #tpu.memory_space<vmem>>, %arg2: memref<2x2xf32, #tpu.memory_space<vmem>>, %arg3: memref<2x1024xbf16, #tpu.memory_space<vmem>>, %arg4: memref<1024x32xbf16, #tpu.memory_space<vmem>>, %arg5: memref<1x32xf32, #tpu.memory_space<vmem>>, %arg6: memref<10x256xbf16, #tpu.memory_space<vmem>>, %arg7: memref<32x256xbf16, #tpu.memory_space<vmem>>, %arg8: memref<2x256xf32, #tpu.memory_space<vmem>>, %arg9: memref<1x256xf32, #tpu.memory_space<vmem>>, %arg10: memref<256x128xbf16, #tpu.memory_space<vmem>>, %arg11: memref<1x128xf32, #tpu.memory_space<vmem>>, %arg12: memref<128x2xbf16, #tpu.memory_space<vmem>>, %arg13: memref<1x2xf32, #tpu.memory_space<vmem>>, %arg14: memref<2x2xf32, #tpu.memory_space<vmem>>) attributes {dimension_semantics = [#tpu.dimension_semantics<parallel>], iteration_bounds = array<i64: 1>, scalar_prefetch = 0 : i64, scratch_operands = 0 : i64, tpu.core_type = #tpu.core_type<tc>, window_params = [{transform_indices = @transform_0, window_bounds = array<i64: 2, 1>}, {transform_indices = @transform_1, window_bounds = array<i64: 2, 2>}, {transform_indices = @transform_2, window_bounds = array<i64: 2, 1024>}, {pipeline_mode = #tpu.pipeline_mode<synchronous>, transform_indices = @transform_3, window_bounds = array<i64: 1024, 32>}, {pipeline_mode = #tpu.pipeline_mode<synchronous>, transform_indices = @transform_4, window_bounds = array<i64: 1, 32>}, {pipeline_mode = #tpu.pipeline_mode<synchronous>, transform_indices = @transform_5, window_bounds = array<i64: 10, 256>}, {pipeline_mode = #tpu.pipeline_mode<synchronous>, transform_indices = @transform_6, window_bounds = array<i64: 32, 256>}, {pipeline_mode = #tpu.pipeline_mode<synchronous>, transform_indices = @transform_7, window_bounds = array<i64: 2, 256>}, {pipeline_mode = #tpu.pipeline_mode<synchronous>, transform_indices = @transform_8, window_bounds = array<i64: 1, 256>}, {pipeline_mode = #tpu.pipeline_mode<synchronous>, transform_indices = @transform_9, window_bounds = array<i64: 256, 128>}, {pipeline_mode = #tpu.pipeline_mode<synchronous>, transform_indices = @transform_10, window_bounds = array<i64: 1, 128>}, {pipeline_mode = #tpu.pipeline_mode<synchronous>, transform_indices = @transform_11, window_bounds = array<i64: 128, 2>}, {pipeline_mode = #tpu.pipeline_mode<synchronous>, transform_indices = @transform_12, window_bounds = array<i64: 1, 2>}, {transform_indices = @transform_13, window_bounds = array<i64: 2, 2>}]} {
    %c0 = arith.constant 0 : index
    %c0_0 = arith.constant 0 : index
    %0 = vector.load %arg3[%c0, %c0_0] : memref<2x1024xbf16, #tpu.memory_space<vmem>>, vector<2x1024xbf16>
    %c0_1 = arith.constant 0 : index
    %c0_2 = arith.constant 0 : index
    %1 = vector.load %arg4[%c0_1, %c0_2] : memref<1024x32xbf16, #tpu.memory_space<vmem>>, vector<1024x32xbf16>
    %cst = arith.constant dense<0.000000e+00> : vector<2x32xf32>
    %2 = tpu.matmul %0, %1, %cst {dimension_numbers = #tpu.dot_dimension_numbers<[1], [0], [0], [1], [0, 0, 1, 1], [], []>} : vector<2x1024xbf16>, vector<1024x32xbf16>, vector<2x32xf32> -> vector<2x32xf32>
    %c0_3 = arith.constant 0 : index
    %c0_4 = arith.constant 0 : index
    %3 = vector.load %arg5[%c0_3, %c0_4] : memref<1x32xf32, #tpu.memory_space<vmem>>, vector<1x32xf32>
    %4 = vector.broadcast %3 : vector<1x32xf32> to vector<2x32xf32>
    %5 = arith.addf %2, %4 : vector<2x32xf32>
    %cst_5 = arith.constant 0.000000e+00 : f32
    %6 = vector.broadcast %cst_5 : f32 to vector<2x32xf32>
    %7 = arith.maximumf %5, %6 : vector<2x32xf32>
    %c0_6 = arith.constant 0 : index
    %c0_7 = arith.constant 0 : index
    %8 = vector.load %arg1[%c0_6, %c0_7] : memref<2x1xi32, #tpu.memory_space<vmem>>, vector<2x1xi32>
    %c0_8 = arith.constant 0 : index
    %c0_9 = arith.constant 0 : index
    %9 = vector.load %arg2[%c0_8, %c0_9] : memref<2x2xf32, #tpu.memory_space<vmem>>, vector<2x2xf32>
    %c0_10 = arith.constant 0 : index
    %c0_11 = arith.constant 0 : index
    %10 = vector.load %arg6[%c0_10, %c0_11] : memref<10x256xbf16, #tpu.memory_space<vmem>>, vector<10x256xbf16>
    %c0_12 = arith.constant 0 : index
    %c0_13 = arith.constant 0 : index
    %11 = vector.load %arg7[%c0_12, %c0_13] : memref<32x256xbf16, #tpu.memory_space<vmem>>, vector<32x256xbf16>
    %c0_14 = arith.constant 0 : index
    %c0_15 = arith.constant 0 : index
    %12 = vector.load %arg8[%c0_14, %c0_15] : memref<2x256xf32, #tpu.memory_space<vmem>>, vector<2x256xf32>
    %c0_16 = arith.constant 0 : index
    %c0_17 = arith.constant 0 : index
    %13 = vector.load %arg9[%c0_16, %c0_17] : memref<1x256xf32, #tpu.memory_space<vmem>>, vector<1x256xf32>
    %c0_18 = arith.constant 0 : index
    %c0_19 = arith.constant 0 : index
    %14 = vector.load %arg10[%c0_18, %c0_19] : memref<256x128xbf16, #tpu.memory_space<vmem>>, vector<256x128xbf16>
    %c0_20 = arith.constant 0 : index
    %c0_21 = arith.constant 0 : index
    %15 = vector.load %arg11[%c0_20, %c0_21] : memref<1x128xf32, #tpu.memory_space<vmem>>, vector<1x128xf32>
    %c0_22 = arith.constant 0 : index
    %c0_23 = arith.constant 0 : index
    %16 = vector.load %arg12[%c0_22, %c0_23] : memref<128x2xbf16, #tpu.memory_space<vmem>>, vector<128x2xbf16>
    %c0_24 = arith.constant 0 : index
    %c0_25 = arith.constant 0 : index
    %17 = vector.load %arg13[%c0_24, %c0_25] : memref<1x2xf32, #tpu.memory_space<vmem>>, vector<1x2xf32>
    %18 = tpu.iota {dimensions = array<i32: 1>} : vector<2x10xi32>
    %19 = vector.broadcast %8 : vector<2x1xi32> to vector<2x10xi32>
    %20 = arith.cmpi eq, %18, %19 : vector<2x10xi32>
    %21 = arith.extui %20 : vector<2x10xi1> to vector<2x10xi32>
    %22 = arith.sitofp %21 : vector<2x10xi32> to vector<2x10xf32>
    %23 = arith.truncf %22 : vector<2x10xf32> to vector<2x10xbf16>
    %cst_26 = arith.constant dense<0.000000e+00> : vector<2x256xf32>
    %24 = tpu.matmul %23, %10, %cst_26 {dimension_numbers = #tpu.dot_dimension_numbers<[1], [0], [0], [1], [0, 0, 1, 1], [], []>} : vector<2x10xbf16>, vector<10x256xbf16>, vector<2x256xf32> -> vector<2x256xf32>
    %25 = vector.extract_strided_slice %9 {offsets = [0, 0], sizes = [2, 1], strides = [1, 1]} : vector<2x2xf32> to vector<2x1xf32>
    %26 = vector.extract_strided_slice %12 {offsets = [0, 0], sizes = [1, 256], strides = [1, 1]} : vector<2x256xf32> to vector<1x256xf32>
    %27 = vector.broadcast %25 : vector<2x1xf32> to vector<2x256xf32>
    %28 = vector.broadcast %26 : vector<1x256xf32> to vector<2x256xf32>
    %29 = arith.mulf %27, %28 : vector<2x256xf32>
    %30 = vector.extract_strided_slice %9 {offsets = [0, 1], sizes = [2, 1], strides = [1, 1]} : vector<2x2xf32> to vector<2x1xf32>
    %31 = vector.extract_strided_slice %12 {offsets = [1, 0], sizes = [1, 256], strides = [1, 1]} : vector<2x256xf32> to vector<1x256xf32>
    %32 = vector.broadcast %30 : vector<2x1xf32> to vector<2x256xf32>
    %33 = vector.broadcast %31 : vector<1x256xf32> to vector<2x256xf32>
    %34 = arith.mulf %32, %33 : vector<2x256xf32>
    %35 = arith.addf %29, %34 : vector<2x256xf32>
    %36 = arith.truncf %7 : vector<2x32xf32> to vector<2x32xbf16>
    %cst_27 = arith.constant dense<0.000000e+00> : vector<2x256xf32>
    %37 = tpu.matmul %36, %11, %cst_27 {dimension_numbers = #tpu.dot_dimension_numbers<[1], [0], [0], [1], [0, 0, 1, 1], [], []>} : vector<2x32xbf16>, vector<32x256xbf16>, vector<2x256xf32> -> vector<2x256xf32>
    %38 = arith.addf %37, %24 : vector<2x256xf32>
    %39 = arith.addf %38, %35 : vector<2x256xf32>
    %40 = vector.broadcast %13 : vector<1x256xf32> to vector<2x256xf32>
    %41 = arith.addf %39, %40 : vector<2x256xf32>
    %cst_28 = arith.constant 0.000000e+00 : f32
    %42 = vector.broadcast %cst_28 : f32 to vector<2x256xf32>
    %43 = arith.maximumf %41, %42 : vector<2x256xf32>
    %44 = arith.truncf %43 : vector<2x256xf32> to vector<2x256xbf16>
    %cst_29 = arith.constant dense<0.000000e+00> : vector<2x128xf32>
    %45 = tpu.matmul %44, %14, %cst_29 {dimension_numbers = #tpu.dot_dimension_numbers<[1], [0], [0], [1], [0, 0, 1, 1], [], []>} : vector<2x256xbf16>, vector<256x128xbf16>, vector<2x128xf32> -> vector<2x128xf32>
    %46 = vector.broadcast %15 : vector<1x128xf32> to vector<2x128xf32>
    %47 = arith.addf %45, %46 : vector<2x128xf32>
    %cst_30 = arith.constant 0.000000e+00 : f32
    %48 = vector.broadcast %cst_30 : f32 to vector<2x128xf32>
    %49 = arith.maximumf %47, %48 : vector<2x128xf32>
    %50 = arith.truncf %49 : vector<2x128xf32> to vector<2x128xbf16>
    %cst_31 = arith.constant dense<0.000000e+00> : vector<2x2xf32>
    %51 = tpu.matmul %50, %16, %cst_31 {dimension_numbers = #tpu.dot_dimension_numbers<[1], [0], [0], [1], [0, 0, 1, 1], [], []>} : vector<2x128xbf16>, vector<128x2xbf16>, vector<2x2xf32> -> vector<2x2xf32>
    %52 = vector.broadcast %17 : vector<1x2xf32> to vector<2x2xf32>
    %53 = arith.addf %51, %52 : vector<2x2xf32>
    %c0_32 = arith.constant 0 : index
    %c0_33 = arith.constant 0 : index
    %54 = vector.load %arg14[%c0_32, %c0_33] : memref<2x2xf32, #tpu.memory_space<vmem>>, vector<2x2xf32>
    tpu.vector_store %arg14[%c0_32, %c0_33], %53 {strides = array<i32>} : memref<2x2xf32, #tpu.memory_space<vmem>>, vector<2x2xf32>,
    return
  }
  func.func @transform_0(%arg0: i32) -> (i32, i32) {
    %c0_i32 = arith.constant 0 : i32
    %c0_i32_0 = arith.constant 0 : i32
    return %arg0, %c0_i32 : i32, i32
  }
  func.func @transform_1(%arg0: i32) -> (i32, i32) {
    %c0_i32 = arith.constant 0 : i32
    %c0_i32_0 = arith.constant 0 : i32
    return %arg0, %c0_i32 : i32, i32
  }
  func.func @transform_2(%arg0: i32) -> (i32, i32) {
    %c0_i32 = arith.constant 0 : i32
    %c0_i32_0 = arith.constant 0 : i32
    return %arg0, %c0_i32 : i32, i32
  }
  func.func @transform_3(%arg0: i32) -> (i32, i32) {
    %c0_i32 = arith.constant 0 : i32
    %c0_i32_0 = arith.constant 0 : i32
    %c0_i32_1 = arith.constant 0 : i32
    return %c0_i32, %c0_i32_0 : i32, i32
  }
  func.func @transform_4(%arg0: i32) -> (i32, i32) {
    %c0_i32 = arith.constant 0 : i32
    %c0_i32_0 = arith.constant 0 : i32
    %c0_i32_1 = arith.constant 0 : i32
    return %c0_i32, %c0_i32_0 : i32, i32
  }
  func.func @transform_5(%arg0: i32) -> (i32, i32) {
    %c0_i32 = arith.constant 0 : i32
    %c0_i32_0 = arith.constant 0 : i32
    %c0_i32_1 = arith.constant 0 : i32
    return %c0_i32, %c0_i32_0 : i32, i32
  }
  func.func @transform_6(%arg0: i32) -> (i32, i32) {
    %c0_i32 = arith.constant 0 : i32
    %c0_i32_0 = arith.constant 0 : i32
    %c0_i32_1 = arith.constant 0 : i32
    return %c0_i32, %c0_i32_0 : i32, i32
  }
  func.func @transform_7(%arg0: i32) -> (i32, i32) {
    %c0_i32 = arith.constant 0 : i32
    %c0_i32_0 = arith.constant 0 : i32
    %c0_i32_1 = arith.constant 0 : i32
    return %c0_i32, %c0_i32_0 : i32, i32
  }
  func.func @transform_8(%arg0: i32) -> (i32, i32) {
    %c0_i32 = arith.constant 0 : i32
    %c0_i32_0 = arith.constant 0 : i32
    %c0_i32_1 = arith.constant 0 : i32
    return %c0_i32, %c0_i32_0 : i32, i32
  }
  func.func @transform_9(%arg0: i32) -> (i32, i32) {
    %c0_i32 = arith.constant 0 : i32
    %c0_i32_0 = arith.constant 0 : i32
    %c0_i32_1 = arith.constant 0 : i32
    return %c0_i32, %c0_i32_0 : i32, i32
  }
  func.func @transform_10(%arg0: i32) -> (i32, i32) {
    %c0_i32 = arith.constant 0 : i32
    %c0_i32_0 = arith.constant 0 : i32
    %c0_i32_1 = arith.constant 0 : i32
    return %c0_i32, %c0_i32_0 : i32, i32
  }
  func.func @transform_11(%arg0: i32) -> (i32, i32) {
    %c0_i32 = arith.constant 0 : i32
    %c0_i32_0 = arith.constant 0 : i32
    %c0_i32_1 = arith.constant 0 : i32
    return %c0_i32, %c0_i32_0 : i32, i32
  }
  func.func @transform_12(%arg0: i32) -> (i32, i32) {
    %c0_i32 = arith.constant 0 : i32
    %c0_i32_0 = arith.constant 0 : i32
    %c0_i32_1 = arith.constant 0 : i32
    return %c0_i32, %c0_i32_0 : i32, i32
  }
  func.func @transform_13(%arg0: i32) -> (i32, i32) {
    %c0_i32 = arith.constant 0 : i32
    %c0_i32_0 = arith.constant 0 : i32
    return %arg0, %c0_i32 : i32, i32
  }
}

</mosaic_0001>

<bundles_post_ra>
// kernel: geo_regression_forward.1
= control target key start
LH: loop header
LB: loop body
LE: loop exit
PB: predicated region body
PF: predicated region fallthrough
CT: control target
= control target key end

     0   :  { %v1640_v1 = vmov 0   ;;  %v1641_v2 = vmov 1   ;;  %v1642_v24 = vmov 1966171168   ;;  %v186_v26 = vlaneseq  ;;  %s2061_s3 = inlined_call_operand.vmem [shape: bf16[1024,32], index: 3, kind: input, shape index: {}]   ;;  %s2062_s2 = inlined_call_operand.vmem [shape: bf16[2,1024], index: 2, kind: input, shape index: {}]   ;;  %s2063_s0 = inlined_call_operand.vmem [shape: s32[2,1], index: 0, kind: input, shape index: {}]   ;;  %s2064_s1 = inlined_call_operand.vmem [shape: f32[2,2], index: 1, kind: input, shape index: {}]   ;;  %s2065_s5 = inlined_call_operand.vmem [shape: bf16[10,256], index: 5, kind: input, shape index: {}]   ;;  %s2066_s6 = inlined_call_operand.vmem [shape: bf16[32,256], index: 6, kind: input, shape index: {}]   ;;  %s2067_s9 = inlined_call_operand.vmem [shape: bf16[256,128], index: 9, kind: input, shape index: {}]   ;;  %s2068_s4 = inlined_call_operand.vmem [shape: f32[1,32], index: 4, kind: input, shape index: {}]   ;;  %s2069_s11 = inlined_call_operand.vmem [shape: bf16[128,2], index: 11, kind: input, shape index: {}]   ;;  %s2070_s7 = inlined_call_operand.vmem [shape: f32[2,256], index: 7, kind: input, shape index: {}]   ;;  %s2071_s8 = inlined_call_operand.vmem [shape: f32[1,256], index: 8, kind: input, shape index: {}]   ;;  %s2072_s10 = inlined_call_operand.vmem [shape: f32[1,128], index: 10, kind: input, shape index: {}]   ;;  %s2073_s12 = inlined_call_operand.vmem [shape: f32[1,2], index: 12, kind: input, shape index: {}]   ;;  %s2074_s13 = inlined_call_operand.vmem [shape: f32[2,2], index: 13, kind: output, shape index: {}]  }
   0x1   :  { %v1542_v0 = vld [vmem:[%s2061_s3 + $0x78] sm:$0xff]   ;;  %1539 = vset.pattern.permute.xlu0 %v1640_v1  ;;  %1540 = vset.pattern.permute.xlu1 %v1641_v2  ;;  %v1546_v6 = vld [vmem:[%s2061_s3 + $0x70] sm:$0xff]   ;;  %v1550_v10 = vld [vmem:[%s2061_s3 + $0x68] sm:$0xff]   ;;  %v184_v25 = vunpack.c.l.s4 %v1642_v24  ;;  %vm865_vm0 = vcmask 1044480   ;;  %vm861_vm2 = vcmask 80896   ;;  %vm986_vm3 = vcmask 261120  }
   0x2   :  { %v1543_v3 = vld [vmem:[%s2061_s3 + $0xf8] sm:$0xff]   ;;  %1395 = vmatprep.subr.bf16.mxu0 %v1542_v0  ;;  %v1547_v7 = vld [vmem:[%s2061_s3 + $0xf0] sm:$0xff]   ;;  %v1551_v11 = vld [vmem:[%s2061_s3 + $0xe8] sm:$0xff]   ;;  %v1796_v32 = vshrl.u32 %v186_v26, 7  ;;  %vm1644_vm4 = vmmov 0   ;;  %vm1288_vm5 = vcmask 9216  }
   0x3   :  { %v1544_v4 = vld [vmem:[%s2061_s3 + $0x38] sm:$0xff]   ;;  %1417 = vmatprep.subr.bf16.mxu1 %v1543_v3  ;;  %v1548_v8 = vld [vmem:[%s2061_s3 + $0x30] sm:$0xff]   ;;  %v1552_v12 = vld [vmem:[%s2061_s3 + $0x28] sm:$0xff]   ;;  %v185_v31 = vunpack.c.0.s8 %v184_v25 }
   0x4   :  { %v1545_v5 = vld [vmem:[%s2061_s3 + $0xb8] sm:$0xff]   ;;  %1396 = vmatpush3.bf16.msra.mxu0 %v1544_v4  ;;  %v1549_v9 = vld [vmem:[%s2061_s3 + $0xb0] sm:$0xff]   ;;  %v1553_v13 = vld [vmem:[%s2061_s3 + $0xa8] sm:$0xff]  }
   0x5   :  { %1418 = vmatpush3.bf16.msra.mxu1 %v1545_v5  ;;  %1397 = vmatprep.subr.bf16.mxu0 %v1546_v6  ;;  %v1554_v14 = vld [vmem:[%s2061_s3 + $0x60] sm:$0xff]   ;;  %v1558_v18 = vld [vmem:[%s2061_s3 + $0x58] sm:$0xff]   ;;  %v1562_v22 = vld [vmem:[%s2061_s3 + $0x50] sm:$0xff]   ;;  %v1811_v37 = vsub.s32 %v185_v31, %v1796_v32 }
   0x6   :  { %1419 = vmatprep.subr.bf16.mxu1 %v1547_v7  ;;  %v1555_v15 = vld [vmem:[%s2061_s3 + $0xe0] sm:$0xff]   ;;  %v1559_v19 = vld [vmem:[%s2061_s3 + $0xd8] sm:$0xff]   ;;  %v1563_v23 = vld [vmem:[%s2061_s3 + $0xd0] sm:$0xff]  }
   0x7   :  { %v1556_v16 = vld [vmem:[%s2061_s3 + $0x20] sm:$0xff]   ;;  %v1560_v20 = vld [vmem:[%s2061_s3 + $0x18] sm:$0xff]   ;;  %v1564_v27 = vld [vmem:[%s2061_s3 + $0x10] sm:$0xff]  }
   0x8   :  { %1398 = vmatpush3.bf16.msra.mxu0 %v1548_v8  ;;  %v1557_v17 = vld [vmem:[%s2061_s3 + $0xa0] sm:$0xff]   ;;  %v1561_v21 = vld [vmem:[%s2061_s3 + $0x98] sm:$0xff]   ;;  %v1565_v28 = vld [vmem:[%s2061_s3 + $0x90] sm:$0xff]  }
   0x9   :  { %1420 = vmatpush3.bf16.msra.mxu1 %v1549_v9  ;;  %1399 = vmatprep.subr.bf16.mxu0 %v1550_v10  ;;  %v1566_v29 = vld [vmem:[%s2061_s3 + $0x48] sm:$0xff]   ;;  %v1570_v35 = vld [vmem:[%s2061_s3 + $0x40] sm:$0xff]   ;;  %v1575_v43 = vld [vmem:[%s2061_s3 + $0x178] sm:$0xff]  }
   0xa   :  { %1421 = vmatprep.subr.bf16.mxu1 %v1551_v11  ;;  %v1567_v30 = vld [vmem:[%s2061_s3 + $0xc8] sm:$0xff]   ;;  %v1571_v36 = vld [vmem:[%s2061_s3 + $0xc0] sm:$0xff]   ;;  %v1576_v44 = vld [vmem:[%s2061_s3 + $0x1f8] sm:$0xff]  }
   0xb   :  { %v1568_v33 = vld [vmem:[%s2061_s3 + $0x8] sm:$0xff]   ;;  %v1572_v38 = vld [vmem:[%s2061_s3] sm:$0xff]   ;;  %v1577_v49 = vld [vmem:[%s2061_s3 + $0x138] sm:$0xff]  }
   0xc   :  { %1400 = vmatpush3.bf16.msra.mxu0 %v1552_v12  ;;  %v1569_v34 = vld [vmem:[%s2061_s3 + $0x88] sm:$0xff]   ;;  %v1573_v39 = vld [vmem:[%s2061_s3 + $0x80] sm:$0xff]   ;;  %v1579_v52 = vld [vmem:[%s2061_s3 + $0x170] sm:$0xff]  }
   0xd   :  { %1422 = vmatpush3.bf16.msra.mxu1 %v1553_v13  ;;  %1401 = vmatprep.subr.bf16.mxu0 %v1554_v14  ;;  %v45_v40 = vld [vmem:[%s2062_s2] sm:$0xff]  ;;  %v1578_v54 = vld [vmem:[%s2061_s3 + $0x1b8] sm:$0xff]   ;;  %v1580_v56 = vld [vmem:[%s2061_s3 + $0x1f0] sm:$0xff]  }
   0xe   :  { %1423 = vmatprep.subr.bf16.mxu1 %v1555_v15  ;;  %v182_v41 = vcombine.high %v45_v40, %v45_v40  ;;  %v189_v42 = vrot.slane %v45_v40, %v1811_v37  ;;  %v1581_v57 = vld [vmem:[%s2061_s3 + $0x130] sm:$0xff]   ;;  %v1583_v59 = vld [vmem:[%s2061_s3 + $0x168] sm:$0xff]   ;;  %v1587_v63 = vld [vmem:[%s2061_s3 + $0x160] sm:$0xff]  }
   0xf   :  { %v1582_v60 = vld [vmem:[%s2061_s3 + $0x1b0] sm:$0xff]   ;;  %v1584_v61 = vld [vmem:[%s2061_s3 + $0x1e8] sm:$0xff]   ;;  %v1588_v3 = vld [vmem:[%s2061_s3 + $0x1e0] sm:$0xff]  }
  0x10   :  { %1402 = vmatpush3.bf16.msra.mxu0 %v1556_v16  ;;  %v197_v45 = vcombine.high %v189_v42, %v189_v42  ;;  %v205_v46 = vrot.slane %v189_v42, %v1811_v37  ;;  %v1831_v47 = vrot.slane %v182_v41, %v1811_v37  ;;  %v1585_v62 = vld [vmem:[%s2061_s3 + $0x128] sm:$0xff]   ;;  %v1589_v4 = vld [vmem:[%s2061_s3 + $0x120] sm:$0xff]   ;;  %v1591_v5 = vld [vmem:[%s2061_s3 + $0x158] sm:$0xff]  }
  0x11   :  { %1424 = vmatpush3.bf16.msra.mxu1 %v1557_v17  ;;  %1403 = vmatprep.subr.bf16.mxu0 %v1558_v18  ;;  %v1586_v0 = vld [vmem:[%s2061_s3 + $0x1a8] sm:$0xff]   ;;  %v1590_v6 = vld [vmem:[%s2061_s3 + $0x1a0] sm:$0xff]   ;;  %v1592_v7 = vld [vmem:[%s2061_s3 + $0x1d8] sm:$0xff]  }
  0x12   :  { %1425 = vmatprep.subr.bf16.mxu1 %v1559_v19  ;;  %v219_v48 = vrot.slane %v197_v45, %v1811_v37  ;;  %v198_v50 = vcombine.high %v1831_v47, %v1831_v47  ;;  %v227_v51 = vcombine.high %v205_v46, %v205_v46  ;;  %v1593_v8 = vld [vmem:[%s2061_s3 + $0x118] sm:$0xff]   ;;  %v1595_v9 = vld [vmem:[%s2061_s3 + $0x150] sm:$0xff]   ;;  %v1599_v13 = vld [vmem:[%s2061_s3 + $0x148] sm:$0xff]  }
  0x13   :  { %v1594_v10 = vld [vmem:[%s2061_s3 + $0x198] sm:$0xff]   ;;  %v1596_v11 = vld [vmem:[%s2061_s3 + $0x1d0] sm:$0xff]   ;;  %v1600_v15 = vld [vmem:[%s2061_s3 + $0x1c8] sm:$0xff]  }
  0x14   :  { %1404 = vmatpush3.bf16.msra.mxu0 %v1560_v20  ;;  %655 = vmatprep.mubr.bf16.mxu0 %v219_v48  ;;  %v229_v53 = vcombine.high %v219_v48, %v219_v48  ;;  %v226_v55 = vrot.slane %v198_v50, %v1811_v37  ;;  %v1597_v12 = vld [vmem:[%s2061_s3 + $0x110] sm:$0xff]   ;;  %v1601_v16 = vld [vmem:[%s2061_s3 + $0x108] sm:$0xff]   ;;  %v1603_v17 = vld [vmem:[%s2061_s3 + $0x140] sm:$0xff]  }
  0x15   :  { %1426 = vmatpush3.bf16.msra.mxu1 %v1561_v21  ;;  %1405 = vmatprep.subr.bf16.mxu0 %v1562_v22  ;;  %v1598_v14 = vld [vmem:[%s2061_s3 + $0x190] sm:$0xff]   ;;  %v1602_v18 = vld [vmem:[%s2061_s3 + $0x188] sm:$0xff]   ;;  %v1604_v19 = vld [vmem:[%s2061_s3 + $0x1c0] sm:$0xff]  }
  0x16   :  { %1427 = vmatprep.subr.bf16.mxu1 %v1563_v23  ;;  %695 = vmatprep.mubr.bf16.mxu1 %v229_v53  ;;  %v230_v58 = vcombine.high %v226_v55, %v226_v55  ;;  %v784_v20 = vld [vmem:[%s2063_s0] sm:$0x3]  ;;  %v212_v23 = vrot.slane %v1831_v47, %v1811_v37  ;;  %v1618_v40 = vld [vmem:[%s2067_s9 + $0x70] sm:$0xff]   ;;  %v1620_v41 = vld [vmem:[%s2067_s9 + $0x68] sm:$0xff]  }
  0x17   :  { %v785_v21 = vld [vmem:[%s2064_s1] sm:$0x3]  ;;  %847 = vperm.xlu0 %1539, %v784_v20   ;;  %v1621_v42 = vld [vmem:[%s2067_s9 + $0x28] sm:$0xff]  }
  0x18   :  { %1406 = vmatpush3.bf16.msra.mxu0 %v1564_v27  ;;  %v1605_v22 = vld [vmem:[%s2061_s3 + $0x100] sm:$0xff]   ;;  %940 = vperm.xlu1 %1540, %v785_v21   ;;  %v228_v25 = vcombine.high %v212_v23, %v212_v23  ;;  %v1634_v20 = vld [vmem:[%s2069_s11 + $0x28] sm:$0xff]  }
  0x19   :  { %1428 = vmatpush3.bf16.msra.mxu1 %v1565_v28  ;;  %1407 = vmatprep.subr.bf16.mxu0 %v1566_v29  ;;  %v1606_v24 = vld [vmem:[%s2061_s3 + $0x180] sm:$0xff]   ;;  %v1610_v29 = vld [vmem:[%s2066_s6 + $0x10] ss:$8 sps:$4 sm:$0xff]  }
  0x1a   :  { %1429 = vmatprep.subr.bf16.mxu1 %v1567_v30  ;;  %v1607_v27 = vld [vmem:[%s2065_s5 + $0x4] ss:$8 sps:$4 sm:$0x1f]   ;;  %v1609_v28 = vld [vmem:[%s2065_s5] ss:$8 sps:$4 sm:$0x1f]  }
  0x1b   :  { %915 = vperm.xlu0 %1539, %v785_v21   ;;  %v867_v30 = vsel %vm865_vm0, %v1609_v28, 0  ;;  %v1613_v31 = vld [vmem:[%s2066_s6] ss:$8 sps:$4 sm:$0xff]   ;;  %v945_v28 = vsub.s32 1, %v1796_v32 }
  0x1c   :  { %1408 = vmatpush3.bf16.msra.mxu0 %v1568_v33  ;;  %v1616_v33 = vld [vmem:[%s2067_s9 + $0x78] sm:$0xff]   ;;  %v1635_v21 = vld [vmem:[%s2069_s11 + $0x20] sm:$0xff]  }
  0x1d   :  { %1430 = vmatpush3.bf16.msra.mxu1 %v1569_v34  ;;  %1409 = vmatprep.subr.bf16.mxu0 %v1570_v35  ;;  %v1643_v34 = vmov 0.0   ;;  %v845_v35 = vand.u32 127, %v186_v26  ;;  %v1619_v26 = vld [vmem:[%s2067_s9 + $0x30] sm:$0xff]  }
  0x1e   :  { %1431 = vmatprep.subr.bf16.mxu1 %v1571_v36 }
  0x1f   :  { %1541 = vset.pattern.permute.xlu0 %v1641_v2  ;;  %v1612_v2 = vld [vmem:[%s2066_s6 + $0x14] ss:$8 sps:$4 sm:$0xff]  }
  0x20   :  { %1410 = vmatpush3.bf16.msra.mxu0 %v1572_v38  ;;  %v1617_v38 = vld [vmem:[%s2067_s9 + $0x38] sm:$0xff]  }
  0x21   :  { %1432 = vmatpush3.bf16.msra.mxu1 %v1573_v39  ;;  %1439 = vmatprep.subr.bf16.mxu0 %v1575_v43 }
  0x22   :  { %1461 = vmatprep.subr.bf16.mxu1 %v1576_v44 }
  0x23   :  { %656 = vmatmul.mubr.bf16.vlgmr.msra.gmra.mxu0 %v205_v46 }
  0x24   :  { %1440 = vmatpush3.bf16.msra.mxu0 %v1577_v49  ;;  %696 = vmatmul.mubr.bf16.vlgmr.msra.gmra.mxu1 %v227_v51  ;;  %v1622_v51 = vld [vmem:[%s2067_s9 + $0x60] sm:$0xff]  }
  0x25   :  { %1441 = vmatprep.subr.bf16.mxu0 %v1579_v52  ;;  %1462 = vmatpush3.bf16.msra.mxu1 %v1578_v54  ;;  %v1623_v52 = vld [vmem:[%s2067_s9 + $0x20] sm:$0xff]  }
  0x26   :  { %735 = vmatprep.mubr.bf16.mxu0 %v226_v55  ;;  %1463 = vmatprep.subr.bf16.mxu1 %v1580_v56  ;;  %v1294_v54 = vld [vmem:[%s2068_s4] ss:$0 sm:$0xff]  ;;  %v1624_v55 = vld [vmem:[%s2067_s9 + $0x58] sm:$0xff]  }
  0x27   :  { %775 = vmatprep.mubr.bf16.mxu1 %v230_v58  ;;  %v1625_v56 = vld [vmem:[%s2067_s9 + $0x18] sm:$0xff]  }
  0x28   :  { %1442 = vmatpush3.bf16.msra.mxu0 %v1581_v57 }
  0x29   :  { %1443 = vmatprep.subr.bf16.mxu0 %v1583_v59  ;;  %1464 = vmatpush3.bf16.msra.mxu1 %v1582_v60 }
  0x2a   :  { %1465 = vmatprep.subr.bf16.mxu1 %v1584_v61 }
  0x2c   :  { %1444 = vmatpush3.bf16.msra.mxu0 %v1585_v62 }
  0x2d   :  { %1445 = vmatprep.subr.bf16.mxu0 %v1587_v63  ;;  %1466 = vmatpush3.bf16.msra.mxu1 %v1586_v0 }
  0x2e   :  { %1467 = vmatprep.subr.bf16.mxu1 %v1588_v3 }
  0x30   :  { %1446 = vmatpush3.bf16.msra.mxu0 %v1589_v4 }
  0x31   :  { %1447 = vmatprep.subr.bf16.mxu0 %v1591_v5  ;;  %1468 = vmatpush3.bf16.msra.mxu1 %v1590_v6 }
  0x32   :  { %1469 = vmatprep.subr.bf16.mxu1 %v1592_v7 }
  0x34   :  { %1448 = vmatpush3.bf16.msra.mxu0 %v1593_v8 }
  0x35   :  { %1449 = vmatprep.subr.bf16.mxu0 %v1595_v9  ;;  %1470 = vmatpush3.bf16.msra.mxu1 %v1594_v10 }
  0x36   :  { %1471 = vmatprep.subr.bf16.mxu1 %v1596_v11 }
  0x38   :  { %1450 = vmatpush3.bf16.msra.mxu0 %v1597_v12  ;;  %v1626_v12 = vld [vmem:[%s2067_s9 + $0x50] sm:$0xff]  }
  0x39   :  { %1451 = vmatprep.subr.bf16.mxu0 %v1599_v13  ;;  %1472 = vmatpush3.bf16.msra.mxu1 %v1598_v14  ;;  %v1627_v13 = vld [vmem:[%s2067_s9 + $0x10] sm:$0xff]   ;;  %v1628_v14 = vld [vmem:[%s2067_s9 + $0x48] sm:$0xff]  }
  0x3a   :  { %1473 = vmatprep.subr.bf16.mxu1 %v1600_v15  ;;  %v1629_v15 = vld [vmem:[%s2067_s9 + $0x8] sm:$0xff]  }
  0x3c   :  { %1452 = vmatpush3.bf16.msra.mxu0 %v1601_v16  ;;  %v1630_v16 = vld [vmem:[%s2067_s9 + $0x40] sm:$0xff]  }
  0x3d   :  { %1453 = vmatprep.subr.bf16.mxu0 %v1603_v17  ;;  %1474 = vmatpush3.bf16.msra.mxu1 %v1602_v18  ;;  %v1631_v17 = vld [vmem:[%s2067_s9] sm:$0xff]   ;;  %v1632_v18 = vld [vmem:[%s2069_s11 + $0x38] sm:$0xff]  }
  0x3e   :  { %1475 = vmatprep.subr.bf16.mxu1 %v1604_v19  ;;  %v1633_v19 = vld [vmem:[%s2069_s11 + $0x30] sm:$0xff]  }
  0x40   :  { %1454 = vmatpush3.bf16.msra.mxu0 %v1605_v22  ;;  %v1636_v22 = vld [vmem:[%s2069_s11 + $0x18] sm:$0xff]  }
  0x41   :  { %1476 = vmatpush3.bf16.msra.mxu1 %v1606_v24  ;;  %1362 = vmatprep.subr.msk.bf16.mxu0 %vm865_vm0, %v1607_v27 }
  0x42   :  { %1002 = vmatprep.subr.bf16.mxu1 %v1612_v2  ;;  %v792_v2 = vld [vmem:[%s2070_s7] sm:$0xf] }
  0x43   :  { %736 = vmatmul.mubr.bf16.vlgmr.msra.gmra.mxu0 %v212_v23 }
  0x44   :  { %904 = vmatprep.mubr.bf16.mxu0 %v1640_v1  ;;  %776 = vmatmul.mubr.bf16.vlgmr.msra.gmra.mxu1 %v228_v25 }
  0x45   :  { %1022 = vmatprep.mubr.bf16.mxu1 %v1640_v1  ;;  %887 = vmatpush1.bf16.msra.mxu0 %v867_v30  ;;  %v1615_v1 = vld [vmem:[%s2066_s6 + $0x4] ss:$8 sps:$4 sm:$0xff]   ;;  %v949_v30 = vsub.s32 3, %v1796_v32 }
  0x46   :  { %1003 = vmatpush1.bf16.msra.mxu1 %v1610_v29  ;;  %1483 = vmatprep.subr.bf16.mxu0 %v1616_v33  ;;  %v921_v29 = vsub.s32 0, %v1796_v32 }
  0x47   :  { %1004 = vmatprep.subr.bf16.mxu1 %v1615_v1  ;;  %v925_v1 = vsub.s32 2, %v1796_v32 }
  0x48   :  { %v922_v33 = vrot.slane %v792_v2, %v921_v29 }
  0x4a   :  { %1005 = vmatpush1.bf16.msra.mxu1 %v1613_v31  ;;  %v946_v31 = vrot.slane %v792_v2, %v945_v28 }
  0x4b   :  { %1514 = vmatprep.subr.bf16.mxu1 %v1643_v34 }
  0x92   :  { %v848_v36 = vpop.permute.xlu0 %847 }
  0x93   :  { %vm849_vm1 = vcmp.eq.s32.totalorder %v845_v35, %v848_v36  ;;  %v950_v35 = vrot.slane %v792_v2, %v949_v30  ;;  %v926_v36 = vrot.slane %v792_v2, %v925_v1 }
  0x94   :  { %v1359_v37 = vsel %vm849_vm1, 1.0, %v1643_v34 }
  0x95   :  { %v852_v39 = vpack.c.bf16 %v1359_v37, %v1359_v37  ;;  %v956_v37 = vrot.slane %v946_v31, %v945_v28 }
  0x97   :  { %1363 = vmatmul.mubr.msk.bf16.vlgmr.msra.gmra.mxu0 %vm861_vm2, %v852_v39  ;;  %v941_v39 = vpop.permute.xlu1 %940 }
  0x98   :  { %1484 = vmatpush3.bf16.msra.mxu0 %v1617_v38  ;;  %v932_v38 = vrot.slane %v922_v33, %v921_v29 }
  0x99   :  { %1485 = vmatprep.subr.bf16.mxu0 %v1618_v40  ;;  %v916_v40 = vpop.permute.xlu0 %915 }
  0x9c   :  { %1486 = vmatpush3.bf16.msra.mxu0 %v1619_v26  ;;  %v960_v26 = vrot.slane %v950_v35, %v945_v28 }
  0x9d   :  { %1487 = vmatprep.subr.bf16.mxu0 %v1620_v41  ;;  %v936_v41 = vrot.slane %v926_v36, %v921_v29 }
  0xa0   :  { %1488 = vmatpush3.bf16.msra.mxu0 %v1621_v42  ;;  %v961_v42 = vmul.f32 %v956_v37, %v941_v39 }
  0xa1   :  { %1489 = vmatprep.subr.bf16.mxu0 %v1622_v51 }
  0xa4   :  { %1490 = vmatpush3.bf16.msra.mxu0 %v1623_v52 }
  0xa5   :  { %1491 = vmatprep.subr.bf16.mxu0 %v1624_v55 }
  0xa8   :  { %1492 = vmatpush3.bf16.msra.mxu0 %v1625_v56 }
  0xa9   :  { %1493 = vmatprep.subr.bf16.mxu0 %v1626_v12 }
  0xac   :  { %1494 = vmatpush3.bf16.msra.mxu0 %v1627_v13 }
  0xad   :  { %1495 = vmatprep.subr.bf16.mxu0 %v1628_v14  ;;  %v1386_v14 = vld [vmem:[%s2073_s12] ss:$0 sm:$0xff] }
  0xb0   :  { %1496 = vmatpush3.bf16.msra.mxu0 %v1629_v15 }
  0xb1   :  { %1497 = vmatprep.subr.bf16.mxu0 %v1630_v16 }
  0xb4   :  { %1498 = vmatpush3.bf16.msra.mxu0 %v1631_v17 }
  0xe3   :  { %v1411_v43 = vpop.f32.mrf.mxu0 }
  0xe4   :  { %v1433_v44 = vpop.f32.mrf.mxu1 }
  0xe5   :  { %v1412_v45 = vpop.f32.mrf.mxu0 }
  0xe6   :  { %v1434_v46 = vpop.f32.mrf.mxu1  ;;  %v1413_v53 = vadd.f32 %v1412_v45, %v1411_v43  ;;  %v937_v43 = vmul.f32 %v932_v38, %v916_v40  ;;  %v962_v45 = vmul.f32 %v960_v26, %v941_v39 }
  0xe7   :  { %v1414_v47 = vpop.f32.mrf.mxu0  ;;  %v1435_v58 = vadd.f32 %v1434_v46, %v1433_v44  ;;  %v793_v44 = vld [vmem:[%s2071_s8] sm:$0x3]  ;;  %v938_v46 = vmul.f32 %v936_v41, %v916_v40 }
  0xe8   :  { %v1436_v48 = vpop.f32.mrf.mxu1  ;;  %v658_v57 = vadd.f32 %v1413_v53, %v1294_v54  ;;  %v963_v32 = vadd.f32 %v961_v42, %v937_v43  ;;  %v1041_v54 = vrot.slane %v793_v44, %v945_v28 }
  0xe9   :  { %v1415_v49 = vpop.f32.mrf.mxu0  ;;  %v964_v51 = vadd.f32 %v962_v45, %v938_v46 }
  0xea   :  { %v1437_v50 = vpop.f32.mrf.mxu1  ;;  %v698_v62 = vadd.f32 %v1435_v58, %v658_v57  ;;  %v1037_v49 = vrot.slane %v793_v44, %v921_v29 }
 0x103   :  { %v1455_v59 = vpop.f32.mrf.mxu0 }
 0x104   :  { %v1477_v60 = vpop.f32.mrf.mxu1 }
 0x105   :  { %v1456_v61 = vpop.f32.mrf.mxu0 }
 0x106   :  { %v1457_v63 = vadd.f32 %v1456_v61, %v1455_v59  ;;  %v1478_v0 = vpop.f32.mrf.mxu1 }
 0x107   :  { %v1458_v3 = vpop.f32.mrf.mxu0  ;;  %v1479_v5 = vadd.f32 %v1478_v0, %v1477_v60  ;;  %v1637_v0 = vld [vmem:[%s2069_s11 + $0x10] sm:$0xff]  }
 0x108   :  { %v738_v4 = vadd.f32 %v1457_v63, %v698_v62  ;;  %v1480_v6 = vpop.f32.mrf.mxu1  ;;  %v1638_v3 = vld [vmem:[%s2069_s11 + $0x8] sm:$0xff]  }
 0x109   :  { %v1459_v7 = vpop.f32.mrf.mxu0  ;;  %v1369_v6 = vld [vmem:[%s2072_s10] ss:$0 sm:$0xff] }
 0x10a   :  { %v778_v8 = vadd.f32 %v1479_v5, %v738_v4  ;;  %v1481_v9 = vpop.f32.mrf.mxu1  ;;  %v1639_v4 = vld [vmem:[%s2069_s11] sm:$0xff]  }
 0x10c   :  { %v783_v10 = vmax.f32 %v778_v8, 0.0 }
 0x10e   :  { %v965_v11 = vpack.c.bf16 %v783_v10, %v783_v10 }
 0x110   :  { %1368 = vmatmul.mubr.msk.bf16.vlgmr.msra.gmra.mxu1 %vm986_vm3, %v965_v11 }
 0x111   :  { %1515 = vmatpush3.bf16.msra.mxu1 %v1632_v18  ;;  %1530 = vmatprep.mubr.msk.bf16.mxu1 %vm1644_vm4, %v1643_v34 }
 0x112   :  { %1516 = vmatprep.subr.bf16.mxu1 %v1643_v34 }
 0x115   :  { %1517 = vmatpush3.bf16.msra.mxu1 %v1633_v19 }
 0x116   :  { %1518 = vmatprep.subr.bf16.mxu1 %v1643_v34 }
 0x119   :  { %1519 = vmatpush3.bf16.msra.mxu1 %v1634_v20 }
 0x11a   :  { %1520 = vmatprep.subr.bf16.mxu1 %v1643_v34 }
 0x11d   :  { %1521 = vmatpush3.bf16.msra.mxu1 %v1635_v21 }
 0x11e   :  { %1522 = vmatprep.subr.bf16.mxu1 %v1643_v34 }
 0x121   :  { %1523 = vmatpush3.bf16.msra.mxu1 %v1636_v22 }
 0x122   :  { %1524 = vmatprep.subr.bf16.mxu1 %v1643_v34 }
 0x125   :  { %1525 = vmatpush3.bf16.msra.mxu1 %v1637_v0 }
 0x126   :  { %1526 = vmatprep.subr.bf16.mxu1 %v1643_v34 }
 0x129   :  { %1527 = vmatpush3.bf16.msra.mxu1 %v1638_v3 }
 0x12a   :  { %1528 = vmatprep.subr.bf16.mxu1 %v1643_v34 }
 0x12d   :  { %1529 = vmatpush3.bf16.msra.mxu1 %v1639_v4 }
 0x157   :  { %v906_v23 = vpop.f32.mrf.mxu0 }
 0x159   :  { %v908_v24 = vpop.f32.mrf.mxu0 }
 0x15b   :  { %v910_v25 = vpop.f32.mrf.mxu0 }
 0x15d   :  { %v911_v27 = vpop.f32.mrf.mxu0 }
 0x1d0   :  { %v1024_v47 = vpop.f32.mrf.mxu1 }
 0x1d1   :  { %v1025_v48 = vadd.f32 %v1024_v47, %v906_v23 }
 0x1d2   :  { %v1026_v50 = vpop.f32.mrf.mxu1 }
 0x1d3   :  { %v1031_v52 = vadd.f32 %v1025_v48, %v963_v32  ;;  %v1027_v53 = vadd.f32 %v1026_v50, %v908_v24 }
 0x1d4   :  { %v1028_v55 = vpop.f32.mrf.mxu1 }
 0x1d5   :  { %v1044_v56 = vadd.f32 %v1037_v49, %v1031_v52  ;;  %v1032_v57 = vadd.f32 %v1027_v53, %v964_v51 }
 0x1d6   :  { %v1029_v58 = vpop.f32.mrf.mxu1 }
 0x1d7   :  { %v1045_v59 = vadd.f32 %v1041_v54, %v1032_v57  ;;  %v1046_v60 = vmax.f32 %v1044_v56, 0.0 }
 0x1d9   :  { %v1047_v61 = vmax.f32 %v1045_v59, 0.0  ;;  %v1048_v63 = vpack.c.bf16 %v1046_v60, %v1046_v60 }
 0x1db   :  { %v1049_v62 = vpack.c.bf16 %v1047_v61, %v1047_v61 }
 0x1dd   :  { %1184 = vmatprep.mubr.bf16.mxu0 %v1049_v62 }
 0x1de   :  { %1185 = vmatmul.mubr.bf16.vlgmr.msra.gmra.mxu0 %v1048_v63 }
 0x29e   :  { %v1499_v5 = vpop.f32.mrf.mxu0 }
 0x2a0   :  { %v1500_v7 = vpop.f32.mrf.mxu0 }
 0x2a1   :  { %v1501_v8 = vadd.f32 %v1500_v7, %v1499_v5 }
 0x2a2   :  { %v1502_v9 = vpop.f32.mrf.mxu0 }
 0x2a3   :  { %v1187_v10 = vadd.f32 %v1501_v8, %v1369_v6 }
 0x2a4   :  { %v1503_v11 = vpop.f32.mrf.mxu0 }
 0x2a5   :  { %v1192_v12 = vmax.f32 %v1187_v10, 0.0 }
 0x2a7   :  { %v1193_v13 = vpack.c.bf16 %v1192_v12, %v1192_v12 }
 0x2a9   :  { %1531 = vmatmul.mubr.bf16.vlgmr.msra.gmra.mxu1 %v1193_v13 }
 0x369   :  { %v1282_v15 = vpop.f32.mrf.mxu1 }
 0x36a   :  { %v1283_v34 = vadd.f32 %v1386_v14, %v1282_v15 }
 0x36b   :  { %v1532_v16 = vpop.f32.mrf.mxu1 }
 0x36c   :  { %1289 = vst.msk [vmem:[%s2074_s13] sm:$0x3] %vm1288_vm5, %v1283_v34 }
 0x36d   :  { %v1285_v17 = vpop.f32.mrf.mxu1 }
 0x36f   :  { %v1533_v18 = vpop.f32.mrf.mxu1 }

</bundles_post_ra>
